<compile_context>
chip_gen: v7x
topology: tpu7x:2x2x1
jax: 0.10.0
libtpu: 0.0.40
codegen_flags: <defaults>
</compile_context>

<pallas_src>
import numpy as np

import jax
import jax.numpy as jnp
from jax import lax
from jax.experimental import pallas as pl
from jax.experimental.pallas import tpu as pltpu


def _dep_label_kernel(emb_ref, att_u_ref, att_v_ref, wl_ref, wr_ref, r_ref,
                      out_ref, pair_ref):
    # emb_ref:   (1, L, E)      one sentence's token embeddings
    # att_u_ref: (1, L, 1, 1)   att as float, broadcastable over the u (row-block) axis
    # att_v_ref: (1, 1, L, 1)   att as float, broadcastable over the v axis
    # wl_ref:    (E, NL)        W[:, :E]^T  (head half of the linear weight)
    # wr_ref:    (E, NL)        W[:, E:]^T  (dependent half of the linear weight)
    # r_ref:     (1, 1, NL)     ones(E) @ Wr^T (start-token contribution, precomputed)
    # out_ref:   (1, L, L, NL)  logits for output rows p = u*L + v (masked rows = -inf)
    # pair_ref:  (L, L, NL)     VMEM scratch holding the pair-row contents
    L = emb_ref.shape[1]

    x = emb_ref[0]                                                        # (L, E)
    a = jnp.dot(x, wl_ref[...], preferred_element_type=jnp.float32)      # (L, NL)
    b = jnp.dot(x, wr_ref[...], preferred_element_type=jnp.float32)      # (L, NL)

    # ---- pair rows: pair_ref[u, v, :] = a[u + carry] + b[(u + v + 1) % L] ----
    # carry(u, v) = (u + v + 1 >= L).  Built incrementally: at step u the loop carries
    #   a_cur[k] = a[(u + k) % L]   and   b_cur[v] = b[(v + u + 1) % L]
    v_col2 = lax.broadcasted_iota(jnp.int32, (L, 1), 0)

    def _fill(u, carry):
        a_cur, b_cur = carry
        head = jnp.where(v_col2 >= L - 1 - u, a_cur[1:2, :], a_cur[0:1, :])   # (L, NL)
        pair_ref[u] = head + b_cur
        return (pltpu.roll(a_cur, shift=L - 1, axis=0),
                pltpu.roll(b_cur, shift=L - 1, axis=0))

    lax.fori_loop(0, L, _fill, (a, pltpu.roll(b, shift=L - 1, axis=0)))

    # ---- assemble: last row-block (u == L-1) holds the start-token rows a[v] + r ----
    u_col = lax.broadcasted_iota(jnp.int32, (L, 1, 1), 0)
    v_row = lax.broadcasted_iota(jnp.int32, (1, L, 1), 1)
    is_start = u_col == (L - 1)                                            # (L, 1, 1)

    start_rows = a[None, :, :] + r_ref[...]                                # (1, L, NL)
    content = jnp.where(is_start, start_rows, pair_ref[...])               # (L, L, NL)

    # ---- validity mask, recomputed in-kernel from att (grid layout p = u*L + v) ----
    valid = ((att_u_ref[0] > 0.5) & (att_v_ref[0] > 0.5) & (u_col != v_row))   # (L, L, 1)
    out_ref[0] = jnp.where(valid, content, -jnp.inf).astype(out_ref.dtype)


def dependency_label_classifier_forward(emb_sentences, att_sentences, weight):
    """emb_sentences: (B, L, E) float32; att_sentences: (B, L) bool;
    weight: (NL, 2E) float32 (PyTorch nn.Linear(2E, NL, bias=False) weight)."""
    emb_sentences = jnp.asarray(emb_sentences, jnp.float32)
    weight = jnp.asarray(weight, jnp.float32)
    B, L, E = emb_sentences.shape
    NL = weight.shape[0]
    assert weight.shape[1] == 2 * E

    # Split the linear weight into head / dependent halves (pre-transposed), and hoist
    # the all-ones start-token contribution out of the kernel.
    wl_t = weight[:, :E].T                                  # (E, NL)
    wr_t = weight[:, E:].T                                  # (E, NL)
    r = jnp.sum(wr_t, axis=0).reshape(1, 1, NL)             # ones(E) @ Wr^T

    # att in the two thin orientations the kernel broadcasts against.
    att_f = att_sentences.astype(jnp.float32)
    att_u = att_f.reshape(B, L, 1, 1)
    att_v = att_f.reshape(B, 1, L, 1)

    flops = B * (4 * L * E * NL + 6 * L * L * NL)
    bytes_accessed = 4 * (B * L * E + 2 * E * NL + 2 * B * L + NL + B * L * L * NL)

    out = pl.pallas_call(
        _dep_label_kernel,
        out_shape=jax.ShapeDtypeStruct((B, L, L, NL), jnp.float32),
        grid_spec=pltpu.PrefetchScalarGridSpec(
            num_scalar_prefetch=0,
            grid=(B,),
            in_specs=[
                pl.BlockSpec((1, L, E), lambda s: (s, 0, 0)),        # emb
                pl.BlockSpec((1, L, 1, 1), lambda s: (s, 0, 0, 0)),  # att (u orientation)
                pl.BlockSpec((1, 1, L, 1), lambda s: (s, 0, 0, 0)),  # att (v orientation)
                pl.BlockSpec((E, NL), lambda s: (0, 0)),             # Wl^T
                pl.BlockSpec((E, NL), lambda s: (0, 0)),             # Wr^T
                pl.BlockSpec((1, 1, NL), lambda s: (0, 0, 0)),       # start contribution r
            ],
            out_specs=pl.BlockSpec((1, L, L, NL), lambda s: (s, 0, 0, 0)),
            scratch_shapes=[pltpu.VMEM((L, L, NL), jnp.float32)],
        ),
        compiler_params=pltpu.CompilerParams(
            dimension_semantics=("parallel",),
        ),
        cost_estimate=pl.CostEstimate(
            flops=flops, transcendentals=0, bytes_accessed=bytes_accessed),
    )(emb_sentences, att_u, att_v, wl_t, wr_t, r)

    # Output rows are p = u*L + v: flatten the (L, L) grid to the module's (L*L,) axis.
    return out.reshape(B, L * L, NL)


if __name__ == "__main__":
    # Small shapes consistent with the module: batch=2, seq=8, embed=16,
    # so the MLP input_dim = 2*16 = 32; num_labels = 32.
    B, L, E, NL = 2, 8, 16, 32

    key = jax.random.PRNGKey(0)
    k_x, k_w = jax.random.split(key)

    emb_sentences = jax.random.normal(k_x, (B, L, E), dtype=jnp.float32)

    # PyTorch-style Linear(2E, NL, bias=False) init.
    bound = 1.0 / ((2 * E) ** 0.5)
    weight = jax.random.uniform(k_w, (NL, 2 * E), dtype=jnp.float32,
                                minval=-bound, maxval=bound)

    # Deterministic attention mask: sentence lengths 8 and 5.
    lengths = jnp.array([8, 5])
    att_sentences = jnp.arange(L)[None, :] < lengths[:, None]              # (B, L) bool

    logits = dependency_label_classifier_forward(emb_sentences, att_sentences, weight)
    jax.block_until_ready(logits)

    # -------- pure-JAX reference mirroring the PyTorch loops --------
    pair_idx = [(i, j) for i in range(L) for j in range(L) if i != j]
    ii = np.array([p[0] for p in pair_idx])
    jj = np.array([p[1] for p in pair_idx])
    emb_pairs = jnp.concatenate(
        [emb_sentences[:, ii, :], emb_sentences[:, jj, :]], axis=-1)       # (B, L(L-1), 2E)
    emb_start = jnp.concatenate(
        [emb_sentences, jnp.ones_like(emb_sentences)], axis=-1)            # (B, L, 2E)
    emb_exp = jnp.concatenate([emb_pairs, emb_start], axis=1)              # (B, L*L, 2E)

    att_pair_ref = (att_sentences[:, :, None] & att_sentences[:, None, :]) \
        & (~jnp.eye(L, dtype=bool))[None]
    att_exp_ref = att_pair_ref.reshape(B, L * L)                           # (B, L*L)

    full_ref = emb_exp @ weight.T                                          # (B, L*L, NL)
    logits_ref = jnp.where(att_exp_ref[..., None], full_ref, -jnp.inf)

    assert logits.shape == (B, L * L, NL)
    assert bool(jnp.allclose(logits, logits_ref, atol=1e-4, rtol=1e-4))

    print("KERNEL_OK")
</pallas_src>

<mosaic_0001>
module attributes {stable_mosaic.version = 11 : i64} {
  func.func @_dep_label_kernel(%arg0: i32, %arg1: memref<1x8x16xf32, #tpu.memory_space<vmem>>, %arg2: memref<1x8x1x1xf32, #tpu.memory_space<vmem>>, %arg3: memref<1x1x8x1xf32, #tpu.memory_space<vmem>>, %arg4: memref<16x32xf32, #tpu.memory_space<vmem>>, %arg5: memref<16x32xf32, #tpu.memory_space<vmem>>, %arg6: memref<1x1x32xf32, #tpu.memory_space<vmem>>, %arg7: memref<1x8x8x32xf32, #tpu.memory_space<vmem>>, %arg8: memref<8x8x32xf32, #tpu.memory_space<vmem>>) attributes {dimension_semantics = [#tpu.dimension_semantics<parallel>], iteration_bounds = array<i64: 2>, scalar_prefetch = 0 : i64, scratch_operands = 1 : i64, tpu.core_type = #tpu.core_type<tc>, window_params = [{transform_indices = @transform_0, window_bounds = array<i64: 1, 8, 16>}, {transform_indices = @transform_1, window_bounds = array<i64: 1, 8, 1, 1>}, {transform_indices = @transform_2, window_bounds = array<i64: 1, 1, 8, 1>}, {pipeline_mode = #tpu.pipeline_mode<synchronous>, transform_indices = @transform_3, window_bounds = array<i64: 16, 32>}, {pipeline_mode = #tpu.pipeline_mode<synchronous>, transform_indices = @transform_4, window_bounds = array<i64: 16, 32>}, {pipeline_mode = #tpu.pipeline_mode<synchronous>, transform_indices = @transform_5, window_bounds = array<i64: 1, 1, 32>}, {transform_indices = @transform_6, window_bounds = array<i64: 1, 8, 8, 32>}]} {
    %c0 = arith.constant 0 : index
    %c0_0 = arith.constant 0 : index
    %c0_1 = arith.constant 0 : index
    %0 = vector.load %arg1[%c0, %c0_0, %c0_1] : memref<1x8x16xf32, #tpu.memory_space<vmem>>, vector<1x8x16xf32>
    %1 = vector.shape_cast %0 : vector<1x8x16xf32> to vector<8x16xf32>
    %c0_2 = arith.constant 0 : index
    %c0_3 = arith.constant 0 : index
    %2 = vector.load %arg4[%c0_2, %c0_3] : memref<16x32xf32, #tpu.memory_space<vmem>>, vector<16x32xf32>
    %cst = arith.constant dense<0.000000e+00> : vector<8x32xf32>
    %3 = tpu.matmul %1, %2, %cst {dimension_numbers = #tpu.dot_dimension_numbers<[1], [0], [0], [1], [0, 0, 1, 1], [], []>} : vector<8x16xf32>, vector<16x32xf32>, vector<8x32xf32> -> vector<8x32xf32>
    %c0_4 = arith.constant 0 : index
    %c0_5 = arith.constant 0 : index
    %4 = vector.load %arg5[%c0_4, %c0_5] : memref<16x32xf32, #tpu.memory_space<vmem>>, vector<16x32xf32>
    %cst_6 = arith.constant dense<0.000000e+00> : vector<8x32xf32>
    %5 = tpu.matmul %1, %4, %cst_6 {dimension_numbers = #tpu.dot_dimension_numbers<[1], [0], [0], [1], [0, 0, 1, 1], [], []>} : vector<8x16xf32>, vector<16x32xf32>, vector<8x32xf32> -> vector<8x32xf32>
    %6 = tpu.iota {dimensions = array<i32: 0>} : vector<8x1xi32>
    %c7_i32 = arith.constant 7 : i32
    %7 = tpu.dynamic_rotate %5 by %c7_i32 dim 0 : vector<8x32xf32>, i32 -> vector<8x32xf32>
    %c0_i32 = arith.constant 0 : i32
    %c8_i32 = arith.constant 8 : i32
    %8 = arith.addi %c0_i32, %c8_i32 : i32
    %c1_i32 = arith.constant 1 : i32
    %9:2 = scf.for %arg9 = %c0_i32 to %8 step %c1_i32 iter_args(%arg10 = %3, %arg11 = %7) -> (vector<8x32xf32>, vector<8x32xf32>)  : i32 {
      %c7_i32_30 = arith.constant 7 : i32
      %46 = arith.subi %c7_i32_30, %arg9 : i32
      %47 = vector.broadcast %46 : i32 to vector<8x1xi32>
      %48 = arith.cmpi sge, %6, %47 : vector<8x1xi32>
      %49 = vector.extract_strided_slice %arg10 {offsets = [1, 0], sizes = [1, 32], strides = [1, 1]} : vector<8x32xf32> to vector<1x32xf32>
      %50 = vector.extract_strided_slice %arg10 {offsets = [0, 0], sizes = [1, 32], strides = [1, 1]} : vector<8x32xf32> to vector<1x32xf32>
      %51 = vector.shape_cast %48 : vector<8x1xi1> to vector<8x1xi1>
      %52 = vector.broadcast %51 : vector<8x1xi1> to vector<8x32xi1>
      %53 = vector.shape_cast %49 : vector<1x32xf32> to vector<1x32xf32>
      %54 = vector.broadcast %53 : vector<1x32xf32> to vector<8x32xf32>
      %55 = vector.shape_cast %50 : vector<1x32xf32> to vector<1x32xf32>
      %56 = vector.broadcast %55 : vector<1x32xf32> to vector<8x32xf32>
      %57 = arith.select %52, %54, %56 : vector<8x32xi1>, vector<8x32xf32>
      %58 = arith.addf %57, %arg11 : vector<8x32xf32>
      %59 = arith.index_cast %arg9 : i32 to index
      %c0_31 = arith.constant 0 : index
      %c0_32 = arith.constant 0 : index
      %60 = vector.load %arg8[%59, %c0_31, %c0_32] : memref<8x8x32xf32, #tpu.memory_space<vmem>>, vector<1x8x32xf32>
      %61 = vector.shape_cast %60 : vector<1x8x32xf32> to vector<8x32xf32>
      %62 = vector.shape_cast %58 : vector<8x32xf32> to vector<1x8x32xf32>
      tpu.vector_store %arg8[%59, %c0_31, %c0_32], %62 {strides = array<i32>} : memref<8x8x32xf32, #tpu.memory_space<vmem>>, vector<1x8x32xf32>,
      %c7_i32_33 = arith.constant 7 : i32
      %63 = tpu.dynamic_rotate %arg10 by %c7_i32_33 dim 0 : vector<8x32xf32>, i32 -> vector<8x32xf32>
      %c7_i32_34 = arith.constant 7 : i32
      %64 = tpu.dynamic_rotate %arg11 by %c7_i32_34 dim 0 : vector<8x32xf32>, i32 -> vector<8x32xf32>
      scf.yield %63, %64 : vector<8x32xf32>, vector<8x32xf32>
    }
    %c8_i32_7 = arith.constant 8 : i32
    %10 = tpu.iota {dimensions = array<i32: 0>} : vector<8x1x1xi32>
    %11 = tpu.iota {dimensions = array<i32: 1>} : vector<1x8x1xi32>
    %c7_i32_8 = arith.constant 7 : i32
    %12 = vector.broadcast %c7_i32_8 : i32 to vector<8x1x1xi32>
    %13 = arith.cmpi eq, %10, %12 : vector<8x1x1xi32>
    %14 = vector.shape_cast %3 : vector<8x32xf32> to vector<1x8x32xf32>
    %c0_9 = arith.constant 0 : index
    %c0_10 = arith.constant 0 : index
    %c0_11 = arith.constant 0 : index
    %15 = vector.load %arg6[%c0_9, %c0_10, %c0_11] : memref<1x1x32xf32, #tpu.memory_space<vmem>>, vector<1x1x32xf32>
    %16 = vector.broadcast %15 : vector<1x1x32xf32> to vector<1x8x32xf32>
    %17 = arith.addf %14, %16 : vector<1x8x32xf32>
    %c0_12 = arith.constant 0 : index
    %c0_13 = arith.constant 0 : index
    %c0_14 = arith.constant 0 : index
    %18 = vector.load %arg8[%c0_12, %c0_13, %c0_14] : memref<8x8x32xf32, #tpu.memory_space<vmem>>, vector<8x8x32xf32>
    %19 = vector.shape_cast %13 : vector<8x1x1xi1> to vector<8x1x1xi1>
    %20 = vector.broadcast %19 : vector<8x1x1xi1> to vector<8x8x32xi1>
    %21 = vector.shape_cast %17 : vector<1x8x32xf32> to vector<1x8x32xf32>
    %22 = vector.broadcast %21 : vector<1x8x32xf32> to vector<8x8x32xf32>
    %23 = arith.select %20, %22, %18 : vector<8x8x32xi1>, vector<8x8x32xf32>
    %c0_15 = arith.constant 0 : index
    %c0_16 = arith.constant 0 : index
    %c0_17 = arith.constant 0 : index
    %c0_18 = arith.constant 0 : index
    %24 = vector.load %arg2[%c0_15, %c0_16, %c0_17, %c0_18] : memref<1x8x1x1xf32, #tpu.memory_space<vmem>>, vector<1x8x1x1xf32>
    %25 = vector.shape_cast %24 : vector<1x8x1x1xf32> to vector<8x1x1xf32>
    %cst_19 = arith.constant 5.000000e-01 : f32
    %26 = vector.broadcast %cst_19 : f32 to vector<8x1x1xf32>
    %27 = arith.cmpf ogt, %25, %26 : vector<8x1x1xf32>
    %c0_20 = arith.constant 0 : index
    %c0_21 = arith.constant 0 : index
    %c0_22 = arith.constant 0 : index
    %c0_23 = arith.constant 0 : index
    %28 = vector.load %arg3[%c0_20, %c0_21, %c0_22, %c0_23] : memref<1x1x8x1xf32, #tpu.memory_space<vmem>>, vector<1x1x8x1xf32>
    %29 = vector.shape_cast %28 : vector<1x1x8x1xf32> to vector<1x8x1xf32>
    %cst_24 = arith.constant 5.000000e-01 : f32
    %30 = vector.broadcast %cst_24 : f32 to vector<1x8x1xf32>
    %31 = arith.cmpf ogt, %29, %30 : vector<1x8x1xf32>
    %32 = vector.broadcast %27 : vector<8x1x1xi1> to vector<8x8x1xi1>
    %33 = vector.broadcast %31 : vector<1x8x1xi1> to vector<8x8x1xi1>
    %34 = arith.andi %32, %33 : vector<8x8x1xi1>
    %35 = vector.broadcast %10 : vector<8x1x1xi32> to vector<8x8x1xi32>
    %36 = vector.broadcast %11 : vector<1x8x1xi32> to vector<8x8x1xi32>
    %37 = arith.cmpi ne, %35, %36 : vector<8x8x1xi32>
    %38 = arith.andi %34, %37 : vector<8x8x1xi1>
    %cst_25 = arith.constant 0xFF800000 : f32
    %39 = vector.shape_cast %38 : vector<8x8x1xi1> to vector<8x8x1xi1>
    %40 = vector.broadcast %39 : vector<8x8x1xi1> to vector<8x8x32xi1>
    %41 = vector.broadcast %cst_25 : f32 to vector<8x8x32xf32>
    %42 = arith.select %40, %23, %41 : vector<8x8x32xi1>, vector<8x8x32xf32>
    %c0_26 = arith.constant 0 : index
    %c0_27 = arith.constant 0 : index
    %c0_28 = arith.constant 0 : index
    %c0_29 = arith.constant 0 : index
    %43 = vector.load %arg7[%c0_26, %c0_27, %c0_28, %c0_29] : memref<1x8x8x32xf32, #tpu.memory_space<vmem>>, vector<1x8x8x32xf32>
    %44 = vector.shape_cast %43 : vector<1x8x8x32xf32> to vector<8x8x32xf32>
    %45 = vector.shape_cast %42 : vector<8x8x32xf32> to vector<1x8x8x32xf32>
    tpu.vector_store %arg7[%c0_26, %c0_27, %c0_28, %c0_29], %45 {strides = array<i32>} : memref<1x8x8x32xf32, #tpu.memory_space<vmem>>, vector<1x8x8x32xf32>,
    return
  }
  func.func @transform_0(%arg0: i32) -> (i32, i32, i32) {
    %c0_i32 = arith.constant 0 : i32
    %c0_i32_0 = arith.constant 0 : i32
    %c0_i32_1 = arith.constant 0 : i32
    return %arg0, %c0_i32, %c0_i32_0 : i32, i32, i32
  }
  func.func @transform_1(%arg0: i32) -> (i32, i32, i32, i32) {
    %c0_i32 = arith.constant 0 : i32
    %c0_i32_0 = arith.constant 0 : i32
    %c0_i32_1 = arith.constant 0 : i32
    %c0_i32_2 = arith.constant 0 : i32
    return %arg0, %c0_i32, %c0_i32_0, %c0_i32_1 : i32, i32, i32, i32
  }
  func.func @transform_2(%arg0: i32) -> (i32, i32, i32, i32) {
    %c0_i32 = arith.constant 0 : i32
    %c0_i32_0 = arith.constant 0 : i32
    %c0_i32_1 = arith.constant 0 : i32
    %c0_i32_2 = arith.constant 0 : i32
    return %arg0, %c0_i32, %c0_i32_0, %c0_i32_1 : i32, i32, i32, i32
  }
  func.func @transform_3(%arg0: i32) -> (i32, i32) {
    %c0_i32 = arith.constant 0 : i32
    %c0_i32_0 = arith.constant 0 : i32
    %c0_i32_1 = arith.constant 0 : i32
    return %c0_i32, %c0_i32_0 : i32, i32
  }
  func.func @transform_4(%arg0: i32) -> (i32, i32) {
    %c0_i32 = arith.constant 0 : i32
    %c0_i32_0 = arith.constant 0 : i32
    %c0_i32_1 = arith.constant 0 : i32
    return %c0_i32, %c0_i32_0 : i32, i32
  }
  func.func @transform_5(%arg0: i32) -> (i32, i32, i32) {
    %c0_i32 = arith.constant 0 : i32
    %c0_i32_0 = arith.constant 0 : i32
    %c0_i32_1 = arith.constant 0 : i32
    %c0_i32_2 = arith.constant 0 : i32
    return %c0_i32, %c0_i32_0, %c0_i32_1 : i32, i32, i32
  }
  func.func @transform_6(%arg0: i32) -> (i32, i32, i32, i32) {
    %c0_i32 = arith.constant 0 : i32
    %c0_i32_0 = arith.constant 0 : i32
    %c0_i32_1 = arith.constant 0 : i32
    %c0_i32_2 = arith.constant 0 : i32
    return %arg0, %c0_i32, %c0_i32_0, %c0_i32_1 : i32, i32, i32, i32
  }
}

</mosaic_0001>

<bundles_post_ra>
// kernel: tpu_custom_call.1
= control target key start
LH: loop header
LB: loop body
LE: loop exit
PB: predicated region body
PF: predicated region fallthrough
CT: control target
= control target key end

     0   :  { %11 = vsyncpa [#allocation4], 0  ;;  %s1228_s0 = inlined_call_operand.vmem [shape: f32[2,8,16], index: 0, kind: input, shape index: {}]   ;;  %s1229_s1 = inlined_call_operand.vmem [shape: f32[2,8,1,1], index: 1, kind: input, shape index: {}]   ;;  %s1230_s2 = inlined_call_operand.vmem [shape: f32[2,1,8,1], index: 2, kind: input, shape index: {}]   ;;  %s1231_s3 = inlined_call_operand.vmem [shape: f32[16,32], index: 3, kind: input, shape index: {}]   ;;  %s1232_s4 = inlined_call_operand.vmem [shape: f32[16,32], index: 4, kind: input, shape index: {}]   ;;  %s1233_s5 = inlined_call_operand.vmem [shape: f32[1,1,32], index: 5, kind: input, shape index: {}]   ;;  %s1234_s6 = inlined_call_operand.hbm [shape: f32[2,8,8,32], index: 6, kind: output, shape index: {}]  }
   0x1   :  { %13 = vsyncpa [#allocation4 + $0x1], 0  ;;  %s993_s21 = smov 0   ;;  %s995_s22 = smov 0  }
   0x2   :  { %s997_s23 = smov 0   ;;  %s999_s24 = smov 0  }
   0x3 LB: > { %s1014_s25 = sadd.s32 4294967295, %s937_s24   ;;  %s748_s26 = sadd.s32 4294967294, %s937_s24   ;;  %s937_s24 = sphi %s999_s24, %s1240_s24   ;;  %s933_s23 = sphi %s997_s23, %s1239_s23   ;;  %s929_s22 = sphi %s995_s22, %s1238_s22   ;;  %s925_s21 = sphi %s993_s21, %s1237_s21  }
   0x4   : > { %s1018_s27 = sadd.s32 1, %s937_s24   ;;  %s167_s28 = sadd.s32 1, %s933_s23 }
   0x5   : > { %s164_s29 = ssub.s32 %s937_s24, %s1018_s27  ;;  %p177_p0 = scmp.ne.s32.totalorder %s933_s23, %s929_s22 }
   0x6   : > { %p165_p1 = scmp.eq.s32.totalorder %s164_s29, 0  ;;  %p178_p2 = scmp.eq.s32.totalorder %s1014_s25, 1 }
   0x7   : > { %p183_p3 = scmp.ne.s32.totalorder %s929_s22, %s925_s21  ;;  %p184_p4 = scmp.eq.s32.totalorder %s748_s26, 1 }
   0x8   : > { %s1029_s30 = scalar_select %p165_p1, %s933_s23, %s167_s28  }
   0x9   : > { %p1031_p5 = por %p178_p2, %p177_p0  ;;  %p1035_p6 = por %p184_p4, %p183_p3 }
   0xa   : > { %p751_p7 = scmp.ge.s32.totalorder %s937_s24, 1  ;;  %p232_p8 = scmp.lt.s32.totalorder %s937_s24, 3 }
   0xc   : > { %p233_p9 = pnand %p751_p7, %p232_p8 }
   0xd   : > { %s266_s9 = sand.u32 (!%p233_p9), 1, %s929_s22   ;;  %v282_v0 = vld [vmem:[%s1231_s3] sm:$0xff] (!%p233_p9)  ;;  %v283_v1 = vld [vmem:[%s1231_s3 + $0x8] sm:$0xff] (!%p233_p9)  ;;  %v951_v3 = vmov (!%p233_p9), 0.0|0.0   ;;  %p269_p10 = scmp.lt.s32.totalorder (!%p233_p9), %s1014_s25, 1  ;;  %vm952_vm0 = vmmov (!%p233_p9), 0   ;;  %v430_v9 = vlaneseq (!%p233_p9) }
   0xe   : > { %236 = sbr.rel (%p233_p9) target bundleno = 412 (0x19c), region = 44  ;;  %v358_v2 = vld [vmem:[%s1232_s4] sm:$0xff] (!%p233_p9)  ;;  %s752_s16 = sshll.u32 (!%p233_p9), %s266_s9, 6  ;;  %786 = vmatprep.subr.bf16.mxu0 (!%p233_p9), %v951_v3  ;;  %789 = vmatprep.subr.bf16.mxu1 (!%p233_p9), %v951_v3  ;;  %v787_v4 = vpack.c.bf16 (!%p233_p9), %v283_v1, %v282_v0  ;;  %v359_v5 = vld [vmem:[%s1232_s4 + $0x8] sm:$0xff] (!%p233_p9)  ;;  %v953_v7 = vmov (!%p233_p9), 0.0   ;;  %vm284_vm1 = vcmask (!%p233_p9), 130048  }
   0xf   : > { %v790_v6 = vpack.c.bf16 (!%p233_p9), %v359_v5, %v358_v2  ;;  %776 = vmatprep.mubr.msk.f32.mxu0 (!%p233_p9), %vm952_vm0, %v953_v7  ;;  %783 = vmatprep.mubr.msk.f32.mxu1 (!%p233_p9), %vm952_vm0, %v953_v7  ;;  %v1074_v10 = vshrl.u32 (!%p233_p9), %v430_v9, 7  ;;  %s1078_s17 = scalar_lea.vmem (!%p233_p9), [#allocation3], %s752_s16  ;;  %s947_s18 = smov (!%p233_p9), 0  }
  0x10   : > { %788 = vmatpush3.bf16.msra.mxu0 (!%p233_p9), %v787_v4 }
  0x11   : > { %791 = vmatpush3.bf16.msra.mxu1 (!%p233_p9), %v790_v6 }
  0x15   : > { %s270_s19 = scalar_select %p269_p10, %s1014_s25, 1 }
  0x17   : > { %s1058_s20 = sshll.u32 %s270_s19, 3 }
  0x18   : > { %s272_s29 = scalar_lea.vmem %s1228_s0, %s1058_s20  ;;  %s1068_s12 = scalar_lea.vmem %s1229_s1, %s1058_s20 }
  0x19   : > { %s280_s15 = scalar_lea.vmem %s1230_s2, %s1058_s20  ;;  %v281_v8 = vld [vmem:[%s272_s29] sm:$0xff] }
  0x1a   : > { %777 = vmatmul.mubr.msk.f32.vlgmr.msra.gmra.mrb[0].mxu0 %vm284_vm1, %v281_v8  ;;  %784 = vmatmul.mubr.msk.f32.vlgmr.msra.gmra.mrb[0].mxu1 %vm284_vm1, %v281_v8 }
  0xed   : > { %v1076_v11 = vpop.f32.mrb[0].mxu0   ;;  %v426_v12 = vpop.f32.mrb[0].mxu1 }
  0xee   : > { %v432_v13 = vrot.slane %v426_v12, 1   ;;  %v778_v14 = vpop.f32.mrb[1].mxu0  ;;  %v785_v15 = vpop.f32.mrb[1].mxu1  ;;  %v943_v17 = vmov %v1076_v11  }
  0xf0   : > { %v939_v16 = vmov %v432_v13  }
  0xf1 LB: >> { %v448_v18 = vsub.s32 1, %v1074_v10  ;;  %v1083_v19 = vsub.s32 0, %v1074_v10  ;;  %s441_s19 = ssub.s32 7, %s949_s18  ;;  %s758_s16 = sshll.u32 %s949_s18, 3  ;;  %v461_v22 = vrot.slane %v941_v16, 1   ;;  %vm458_vm3 = vcmask 261120   ;;  %s949_s18 = sphi %s947_s18, %s438_s18   ;;  %v945_v17 = vphi %v943_v17, %v460_v17   ;;  %v941_v16 = vphi %v939_v16, %v940_v16  }
  0xf2   : >> { %v442_v23 = vstv %s441_s19  ;;  %s457_s26 = scalar_lea.vmem [#allocation2], %s758_s16  ;;  %s438_s18 = sadd.s32 1, %s949_s18  }
  0xf3   : >> { %v449_v20 = vrot.slane %v945_v17, %v448_v18  ;;  %v453_v21 = vrot.slane %v945_v17, %v1083_v19  ;;  %v460_v17 = vrot.slane %v945_v17, 1   ;;  %vm443_vm2 = vcmp.ge.s32.totalorder %v1074_v10, %v442_v23  ;;  %p435_p11 = scmp.ge.s32.totalorder %s438_s18, 8  }
  0xf4   : > { %v488_v26 = vld [vmem:[%s1068_s12 + $0x2] sm:$0x1] (%p435_p11)  ;;  %v954_v28 = vmov (%p435_p11), 0   ;;  %v486_v29 = vld [vmem:[%s1068_s12] sm:$0x1] (%p435_p11)  ;;  %vm564_vm9 = vcmp.ne.s32.totalorder (%p435_p11), %v1074_v10, 2 }
  0xf5   : >> { %v454_v24 = vsel %vm443_vm2, %v449_v20, %v453_v21  ;;  %437 = sbr.rel (!%p435_p11) target bundleno = 241 (0xf1), region = 93  ;;  %v1094_v27 = vld [vmem:[%s280_s15] sm:$0xff] (%p435_p11)  ;;  %862 = vset.pattern.permute.xlu1 (%p435_p11), %v954_v28  ;;  %861 = vset.pattern.permute.xlu0 (%p435_p11), %v954_v28  ;;  %vm496_vm4 = vcmp.gt.f32.partialorder (%p435_p11), %v488_v26, 0.5  ;;  %vm494_vm6 = vcmp.gt.f32.partialorder (%p435_p11), %v486_v29, 0.5  ;;  %vm562_vm14 = vcmp.ne.s32.totalorder (%p435_p11), %v1074_v10, 0  ;;  %s765_s11 = sshll.u32 (%p435_p11), %s1014_s25, 10 }
  0xf6   : >> { %v455_v25 = vadd.f32 %v941_v16, %v454_v24  ;;  %v940_v16 = vmov %v461_v22   ;;  %v489_v30 = vld [vmem:[%s1068_s12 + $0x3] sm:$0x1] (%p435_p11)  ;;  %vm503_vm5 = vcmp.gt.f32.partialorder (%p435_p11), %v1094_v27, 0.5  ;;  %v506_v31 = vsel (%p435_p11), %vm496_vm4, 1, %v954_v28  ;;  %v487_v32 = vld [vmem:[%s1068_s12 + $0x1] sm:$0x1] (%p435_p11)  ;;  %s1177_s15 = scalar_lea.hbm (%p435_p11), %s1234_s6, %s765_s11 }
  0xf7   : > { %vm497_vm7 = vcmp.gt.f32.partialorder (%p435_p11), %v489_v30, 0.5  ;;  %v523_v33 = vrot.slane (%p435_p11), %v506_v31, %v1083_v19  ;;  %v504_v34 = vsel (%p435_p11), %vm494_vm6, 1, %v954_v28  ;;  %vm495_vm8 = vcmp.gt.f32.partialorder (%p435_p11), %v487_v32, 0.5  ;;  %v491_v36 = vld [vmem:[%s1068_s12 + $0x5] sm:$0x1] (%p435_p11)  ;;  %s1187_s25 = scalar_lea.sflag (%p435_p11), [#allocation4], %s266_s9 }
  0xf8   : >> { %459 = vst.msk [vmem:[%s457_s26] sm:$0xff] %vm458_vm3, %v455_v25  ;;  %v507_v35 = vsel (%p435_p11), %vm497_vm7, 1, %v954_v28  ;;  %v515_v37 = vrot.slane (%p435_p11), %v504_v34, %v1083_v19  ;;  %v505_v39 = vsel (%p435_p11), %vm495_vm8, 1, %v954_v28  ;;  %v490_v40 = vld [vmem:[%s1068_s12 + $0x4] sm:$0x1] (%p435_p11)  ;;  %vm499_vm11 = vcmp.gt.f32.partialorder (%p435_p11), %v491_v36, 0.5 }
  0xf9   : > { %v527_v38 = vrot.slane (%p435_p11), %v507_v35, %v1083_v19  ;;  %vm546_vm10 = vcmp.eq.s32.totalorder (%p435_p11), %v523_v33, 1  ;;  %v519_v41 = vrot.slane (%p435_p11), %v505_v39, %v1083_v19  ;;  %v493_v42 = vld [vmem:[%s1068_s12 + $0x7] sm:$0x1] (%p435_p11)  ;;  %v509_v43 = vsel (%p435_p11), %vm499_vm11, 1, %v954_v28  ;;  %v492_v44 = vld [vmem:[%s1068_s12 + $0x6] sm:$0x1] (%p435_p11) }
  0xfa   : > { %vm556_vm12 = vmand (%p435_p11), %vm546_vm10, %vm503_vm5  ;;  %vm544_vm13 = vcmp.eq.s32.totalorder (%p435_p11), %v515_v37, 1  ;;  %vm498_vm15 = vcmp.gt.f32.partialorder (%p435_p11), %v490_v40, 0.5  ;;  %v535_v45 = vrot.slane (%p435_p11), %v509_v43, %v1083_v19  ;;  %vm565_vm4 = vcmp.ne.s32.totalorder (%p435_p11), %v1074_v10, 3  ;;  %v759_v8 = vld [vmem:[%s1233_s5] ss:$0 sm:$0xff] (%p435_p11)  ;;  %s649_s12 = sshll.u32 (%p435_p11), %s1078_s17, 4  ;;  %s1179_s12 = int_to_ptr.vmem [resolvable:$true] %s649_s12 }
  0xfb   : > { %vm572_vm0 = vmand (%p435_p11), %vm556_vm12, %vm564_vm9  ;;  %vm547_vm1 = vcmp.eq.s32.totalorder (%p435_p11), %v527_v38, 1  ;;  %v508_v46 = vsel (%p435_p11), %vm498_vm15, 1, %v954_v28  ;;  %vm501_vm6 = vcmp.gt.f32.partialorder (%p435_p11), %v493_v42, 0.5  ;;  %vm545_vm8 = vcmp.eq.s32.totalorder (%p435_p11), %v519_v41, 1  ;;  %s863_s18 = scalar_lea.vmem (%p435_p11), %s1179_s12, 1024  ;;  %s955_s19 = smov (%p435_p11), [#allocation3]  }
  0xfc   : > { %v580_v47 = vsel %vm572_vm0, 1, %v954_v28  ;;  %vm554_vm2 = vmand %vm544_vm13, %vm503_vm5  ;;  %v531_v48 = vrot.slane %v508_v46, %v1083_v19  ;;  %v511_v49 = vsel %vm501_vm6, 1, %v954_v28  ;;  %vm500_vm9 = vcmp.gt.f32.partialorder %v492_v44, 0.5  ;;  %p864_p12 = scmp.ne.s32.totalorder %s1179_s12, %s863_s18  ;;  %s867_s16 = sshll.u32 %s955_s19, 4  ;;  %s868_s16 = int_to_ptr.vmem [resolvable:$false] %s867_s16 }
  0xfd   : > { %593 = vperm.xlu1 %862, %v580_v47   ;;  %vm570_vm7 = vmand %vm554_vm2, %vm562_vm14  ;;  %vm563_vm11 = vcmp.ne.s32.totalorder %v1074_v10, 1  ;;  %v510_v51 = vsel %vm500_vm9, 1, %v954_v28  ;;  %vm549_vm13 = vcmp.eq.s32.totalorder %v535_v45, 1  ;;  %v543_v52 = vrot.slane %v511_v49, %v1083_v19  ;;  %s869_s26 = scalar_lea.vmem %s868_s16, 2048  ;;  %p870_p1 = scmp.lt.s32.totalorder %s1179_s12, %s868_s16 }
  0xfe   : > { %v578_v50 = vsel %vm570_vm7, 1, %v954_v28  ;;  %vm557_vm10 = vmand %vm547_vm1, %vm503_vm5  ;;  %vm567_vm15 = vcmp.ne.s32.totalorder %v1074_v10, 5  ;;  %vm548_vm2 = vcmp.eq.s32.totalorder %v531_v48, 1  ;;  %v539_v54 = vrot.slane %v510_v51, %v1083_v19  ;;  %p865_p13 = pnand %p864_p12, %p1031_p5  ;;  %p871_p2 = scmp.lt.s32.totalorder %s869_s26, %s863_s18 }
  0xff   : > { %587 = vperm.xlu0 %861, %v578_v50   ;;  %vm573_vm12 = vmand %vm557_vm10, %vm565_vm4  ;;  %vm566_vm4 = vcmp.ne.s32.totalorder %v1074_v10, 4  ;;  %vm551_vm7 = vcmp.eq.s32.totalorder %v543_v52, 1  ;;  %vm569_vm9 = vcmp.ne.s32.totalorder %v1074_v10, 7  ;;  %v472_v60 = vld [vmem:[#allocation2 + $0x10] sm:$0xff]  ;;  %v470_v62 = vld [vmem:[#allocation2] sm:$0xff]  ;;  %v469_v15 = vadd.f32 %v759_v8, %v1076_v11 }
 0x100   : > { %v581_v53 = vsel %vm573_vm12, 1, %v954_v28  ;;  %vm555_vm14 = vmand %vm545_vm8, %vm503_vm5  ;;  %v473_v1 = vld [vmem:[#allocation2 + $0x18] sm:$0xff]  ;;  %v471_v4 = vld [vmem:[#allocation2 + $0x8] sm:$0xff]  ;;  %p866_p0 = pneg %p865_p13  ;;  %p872_p3 = por %p871_p2, %p870_p1 }
 0x101   : > { %596 = vperm.xlu1 %862, %v581_v53   ;;  %vm571_vm0 = vmand %vm555_vm14, %vm563_vm11  ;;  %vm550_vm11 = vcmp.eq.s32.totalorder %v539_v54, 1  ;;  %v475_v7 = vld [vmem:[#allocation2 + $0x28] sm:$0xff]  ;;  %v474_v12 = vld [vmem:[#allocation2 + $0x20] sm:$0xff] }
 0x102   : > { %v579_v55 = vsel %vm571_vm0, 1, %v954_v28  ;;  %vm559_vm1 = vmand %vm549_vm13, %vm503_vm5  ;;  %vm568_vm13 = vcmp.ne.s32.totalorder %v1074_v10, 6  ;;  %v476_v18 = vld [vmem:[#allocation2 + $0x30] sm:$0xff]  ;;  %p873_p4 = pnand %p872_p3, %p866_p0 }
 0x103   : > { %590 = vperm.xlu0 %861, %v579_v55   ;;  %vm575_vm6 = vmand %vm559_vm1, %vm567_vm15 }
 0x104   : > { %v583_v56 = vsel %vm575_vm6, 1, %v954_v28  ;;  %vm558_vm8 = vmand %vm548_vm2, %vm503_vm5 }
 0x105   : > { %602 = vperm.xlu1 %862, %v583_v56   ;;  %vm574_vm10 = vmand %vm558_vm8, %vm566_vm4 }
 0x106   : > { %v582_v57 = vsel %vm574_vm10, 1, %v954_v28  ;;  %vm561_vm12 = vmand %vm551_vm7, %vm503_vm5 }
 0x107   : > { %599 = vperm.xlu0 %861, %v582_v57   ;;  %vm577_vm14 = vmand %vm561_vm12, %vm569_vm9 }
 0x108   : > { %v585_v58 = vsel %vm577_vm14, 1, %v954_v28  ;;  %vm560_vm15 = vmand %vm550_vm11, %vm503_vm5 }
 0x109   : > { %608 = vperm.xlu1 %862, %v585_v58   ;;  %vm576_vm0 = vmand %vm560_vm15, %vm568_vm13 }
 0x10a   : > { %v584_v59 = vsel %vm576_vm0, 1, %v954_v28 }
 0x10b   : > { %605 = vperm.xlu0 %861, %v584_v59  }
 0x17c   : > { %v594_v61 = vpop.permute.xlu1 %593 }
 0x17d   : > { %vm612_vm2 = vcmp.eq.s32.totalorder %v594_v61, 1 }
 0x17e   : > { %v620_v63 = vsel %vm612_vm2, %v472_v60, -inf  ;;  %v588_v0 = vpop.permute.xlu0 %587 }
 0x17f   : > { %629 = vst.msk [vmem:[%s1078_s17 + $0x10] sm:$0xff] %vm458_vm3, %v620_v63  ;;  %vm610_vm1 = vcmp.eq.s32.totalorder %v588_v0, 1 }
 0x180   : > { %v618_v2 = vsel %vm610_vm1, %v470_v62, -inf  ;;  %v597_v3 = vpop.permute.xlu1 %596 }
 0x181   : > { %627 = vst.msk [vmem:[%s1078_s17] sm:$0xff] %vm458_vm3, %v618_v2  ;;  %vm613_vm5 = vcmp.eq.s32.totalorder %v597_v3, 1 }
 0x182   : > { %v621_v5 = vsel %vm613_vm5, %v473_v1, -inf  ;;  %v591_v6 = vpop.permute.xlu0 %590 }
 0x183   : > { %630 = vst.msk [vmem:[%s1078_s17 + $0x18] sm:$0xff] %vm458_vm3, %v621_v5  ;;  %vm611_vm4 = vcmp.eq.s32.totalorder %v591_v6, 1 }
 0x184   : > { %v619_v9 = vsel %vm611_vm4, %v471_v4, -inf  ;;  %v603_v10 = vpop.permute.xlu1 %602 }
 0x185   : > { %628 = vst.msk [vmem:[%s1078_s17 + $0x8] sm:$0xff] %vm458_vm3, %v619_v9  ;;  %vm615_vm6 = vcmp.eq.s32.totalorder %v603_v10, 1 }
 0x186   : > { %v623_v13 = vsel %vm615_vm6, %v475_v7, -inf  ;;  %v600_v14 = vpop.permute.xlu0 %599 }
 0x187   : > { %632 = vst.msk [vmem:[%s1078_s17 + $0x28] sm:$0xff] %vm458_vm3, %v623_v13  ;;  %vm614_vm7 = vcmp.eq.s32.totalorder %v600_v14, 1 }
 0x188   : > { %v622_v16 = vsel %vm614_vm7, %v474_v12, -inf  ;;  %v609_v17 = vpop.permute.xlu1 %608 }
 0x189   : > { %631 = vst.msk [vmem:[%s1078_s17 + $0x20] sm:$0xff] %vm458_vm3, %v622_v16  ;;  %vm617_vm8 = vcmp.eq.s32.totalorder %v609_v17, 1 }
 0x18a   : > { %v625_v19 = vsel %vm617_vm8, %v469_v15, -inf  ;;  %v606_v20 = vpop.permute.xlu0 %605 }
 0x18b   : > { %634 = vst.msk [vmem:[%s1078_s17 + $0x38] sm:$0xff] %vm458_vm3, %v625_v19  ;;  %vm616_vm9 = vcmp.eq.s32.totalorder %v606_v20, 1 }
 0x18c   : > { %v624_v11 = vsel %vm616_vm9, %v476_v18, -inf }
 0x18d   : > { %633 = vst.msk [vmem:[%s1078_s17 + $0x30] sm:$0xff] %vm458_vm3, %v624_v11 }
 0x18e   : > { %876 = shalt.err (!%p873_p4)
}
 0x18f   : > { %s877_s9 = scalar_lea.hbm %s1177_s15, 1024  ;;  %s881_s29 = scalar_lea.hbm %s1234_s6, 2048 }
 0x190   : > { %p878_p7 = scmp.ne.s32.totalorder %s1177_s15, %s877_s9  ;;  %p882_p10 = scmp.lt.u32.totalorder %s1177_s15, %s1234_s6 }
 0x191   : > { %p883_p11 = scmp.lt.u32.totalorder %s881_s29, %s877_s9  ;;  %p885_p13 = scmp.lt.u32.totalorder %s877_s9, %s1177_s15 }
 0x192   : > { %p879_p8 = pnand %p878_p7, %p1031_p5 }
 0x193   : > { %p884_p12 = por %p883_p11, %p882_p10 }
 0x194   : > { %p880_p9 = pneg %p879_p8 }
 0x195   : > { %p886_p0 = por %p885_p13, %p884_p12 }
 0x197   : > { %p887_p1 = pnand %p886_p0, %p880_p9 }
 0x199   : > { %890 = shalt.err (!%p887_p1)
}
 0x19a   : > { %s956_s11 = smov 128   ;;  %s957_s13 = smov 8  }
 0x19b   : > { %792 = dma.vmem_to_hbm [thread:$0]  (%p1031_p5), %s1179_s12, 1024, %s1177_s15, %s1187_s25, %s956_s11, %s956_s11, %s957_s13  }
 0x19c PF: > { %p798_p2 = scmp.ge.s32.totalorder %s937_s24, 2  ;;  %s664_s14 = sand.u32 1, %s925_s21  }
 0x19d   : > { %s665_s18 = scalar_lea.sflag [#allocation4], %s664_s14 }
 0x19e   : > { %p795_p3 = pnand %p798_p2, %p1035_p6 }
 0x1a0   : > { %920 = dma.done.wait (!%p795_p3), %s665_s18, 1024  }
 0x1a1   : > { %922 = vsyncadd (!%p795_p3), %s665_s18, 4294966272  ;;  %p16_p4 = scmp.ge.s32.totalorder %s1018_s27, 4   ;;  %s1237_s21 = smov %s929_s22 }
 0x1a2   : > { %s1238_s22 = smov %s933_s23  ;;  %s1239_s23 = smov %s1029_s30 }
 0x1a3   : > { %s1240_s24 = smov %s1018_s27  ;;  %18 = sbr.rel (!%p16_p4) target bundleno = 3 (0x3), region = 104 }
 0x1aa   :  { %670 = vsyncpa [#allocation4], 1 }
 0x1ab   :  { %672 = vsyncpa [#allocation4 + $0x1], 1 }

</bundles_post_ra>
